<compile_context>
chip_gen: v5e
topology: v5e:2x2
jax: 0.10.0
libtpu: 0.0.40
codegen_flags: <defaults>
</compile_context>

<pallas_src>
import functools

import jax
import jax.numpy as jnp
from jax.experimental import pallas as pl
from jax.experimental.pallas import tpu as pltpu


# ----------------------------------------------------------------------------
# Pallas kernel: whole ConvBlock forward in one invocation (shapes are small,
# everything fits comfortably in VMEM; no grid needed).
# ----------------------------------------------------------------------------
def conv_block_kernel(x_ref, w1_ref, w2_ref, s_ref, g_ref, pw_ref, ph_ref,
                      g1_ref, b1_ref, g2_ref, b2_ref, out_ref, *,
                      inv_count, eps):
    f32 = jnp.float32

    def conv3x3(act, w_ref):
        # act: (N*H, W*C_in);  w_ref: (3, W*C_in, W*C_out) banded weights.
        # dh = 0 (center row): the shift matrix is the identity -> skip it.
        acc = jnp.dot(act, w_ref[1], preferred_element_type=f32)
        for d in (0, 2):                       # dh = -1, +1
            shifted = jnp.dot(s_ref[d], act, preferred_element_type=f32)
            acc = acc + jnp.dot(shifted, w_ref[d], preferred_element_type=f32)
        return acc

    def fold_rows(v):
        # (R, L) -> (8, L): sum vreg-aligned 8-row chunks (aligned static
        # slices + VPU adds, no relayout).  Shrinks the BN-stat matmul below
        # from M=R rows to M=8 rows while preserving the total sum exactly.
        acc = v[0:8, :]
        for i in range(1, v.shape[0] // 8):
            acc = acc + v[8 * i:8 * (i + 1), :]
        return acc

    def bn_relu(y, gamma, beta):
        # One-pass training-mode batch stats (biased variance), f32 accumulate.
        # G sums the W groups per channel and leaves the result lane-broadcast,
        # so the normalization itself is pure full-width VPU work.
        g = g_ref[...]
        sums = jnp.dot(fold_rows(y), g, preferred_element_type=f32)      # (8, WC)
        sqs = jnp.dot(fold_rows(y * y), g, preferred_element_type=f32)   # (8, WC)
        mean = jnp.sum(sums, axis=0, keepdims=True) * inv_count
        meansq = jnp.sum(sqs, axis=0, keepdims=True) * inv_count
        var = meansq - mean * mean
        yn = (y - mean) * jax.lax.rsqrt(var + eps) * gamma + beta
        return jnp.maximum(yn, 0.0)

    x = x_ref[...]                                           # (N*H, W*Cin)
    y1 = bn_relu(conv3x3(x, w1_ref), g1_ref[...], b1_ref[...])   # (N*H, W*Cout)
    y2 = bn_relu(conv3x3(y1, w2_ref), g2_ref[...], b2_ref[...])  # (N*H, W*Cout)

    # 2x2 average pool.  H-pool (row space, halves the rows) runs FIRST so the
    # big (WC, WC) W-pool matmul only sees N*H/2 rows; result is already the
    # lane-dense output slab (full-width store).
    hpooled = jnp.dot(ph_ref[...], y2, preferred_element_type=f32)   # (N*H/2, WC)
    out_ref[...] = jnp.dot(hpooled, pw_ref[...], preferred_element_type=f32)


# ----------------------------------------------------------------------------
# Wrapper-side constant matrices (layout / weight plumbing, built by XLA)
# ----------------------------------------------------------------------------
def _band_weights(w_hwio, W):
    """(3,3,Cin,Cout) HWIO -> (3, W*Cin, W*Cout) block-banded matrices.

    mats[kh][win*Cin+ci, wout*Cout+co] = w[kh, win-wout+1, ci, co] if
    |win-wout| <= 1 else 0 (zero padding along W is implicit)."""
    KH, KW, Cin, Cout = w_hwio.shape
    dw = jnp.arange(W)[:, None] - jnp.arange(W)[None, :]          # (W, W)
    mats = []
    for kh in range(KH):
        m = jnp.zeros((W, Cin, W, Cout), jnp.float32)
        for kw in range(KW):
            sel = (dw == (kw - 1)).astype(jnp.float32)            # (W, W)
            m = m + sel[:, None, :, None] * w_hwio[kh, kw][None, :, None, :]
        mats.append(m.reshape(W * Cin, W * Cout))
    return jnp.stack(mats, axis=0)


def _h_shift_mats(N, H):
    """(3, N*H, N*H): row-shift matrices for dh in (-1, 0, +1), zero at the
    image borders (implements the zero padding along H)."""
    NH = N * H
    rows = jnp.arange(NH)
    h = rows % H
    mats = []
    for dh in (-1, 0, 1):
        valid = ((h + dh >= 0) & (h + dh < H)).astype(jnp.float32)
        m = jax.nn.one_hot(rows + dh, NH, dtype=jnp.float32) * valid[:, None]
        mats.append(m)
    return jnp.stack(mats, axis=0)


def _group_sum_mat(W, C):
    """(W*C, W*C): sums the W groups per channel, result lane-broadcast."""
    return jnp.tile(jnp.eye(C, dtype=jnp.float32), (W, W))


def _w_pool_mat(W, C):
    """(W*C, W*C): averages lane pairs (2w, 2w+1) per channel into the first
    (W/2)*C lanes; remaining lanes are zero (padding keeps the store 128-wide)."""
    sel = ((jnp.arange(W)[:, None] // 2) == jnp.arange(W)[None, :])
    sel = sel.astype(jnp.float32) * 0.5                           # (W, W)
    eyeC = jnp.eye(C, dtype=jnp.float32)
    return (sel[:, None, :, None] * eyeC[None, :, None, :]).reshape(W * C, W * C)


def _h_pool_mat(N, H):
    """(N*H/2, N*H): averages row pairs (2h2, 2h2+1) within each image."""
    H2 = H // 2
    r = jnp.arange(N * H2)
    c = jnp.arange(N * H)
    same_n = (r[:, None] // H2) == (c[None, :] // H)
    same_h2 = (r[:, None] % H2) == ((c[None, :] % H) // 2)
    return (same_n & same_h2).astype(jnp.float32) * 0.5


# ----------------------------------------------------------------------------
# Forward wrapper: layout conversion + pallas_call
# ----------------------------------------------------------------------------
def conv_block_forward(x_nchw, w1_oihw, w2_oihw, gamma1, beta1, gamma2, beta2,
                       eps):
    N, Cin, H, W = x_nchw.shape
    Cout = w1_oihw.shape[0]
    assert H % 2 == 0 and W % 2 == 0
    assert (N * H) % 8 == 0  # fold_rows needs vreg-aligned row chunks

    # NCHW -> (N*H, W*Cin) slab: rows = (n, h), lanes = (w, ci)   (glue)
    x2d = (jnp.transpose(x_nchw, (0, 2, 3, 1)).astype(jnp.float32)
           .reshape(N * H, W * Cin))
    # OIHW -> HWIO -> banded matrices                              (glue)
    w1_hwio = jnp.transpose(w1_oihw, (2, 3, 1, 0)).astype(jnp.float32)
    w2_hwio = jnp.transpose(w2_oihw, (2, 3, 1, 0)).astype(jnp.float32)
    w1b = _band_weights(w1_hwio, W)           # (3, W*Cin,  W*Cout)
    w2b = _band_weights(w2_hwio, W)           # (3, W*Cout, W*Cout)
    smats = _h_shift_mats(N, H)               # (3, N*H, N*H)
    gmat = _group_sum_mat(W, Cout)            # (W*Cout, W*Cout)
    pw = _w_pool_mat(W, Cout)                 # (W*Cout, W*Cout)
    ph = _h_pool_mat(N, H)                    # (N*H/2, N*H)

    # gamma/beta broadcast to the (w, c) lane layout               (glue)
    g1 = jnp.tile(gamma1.astype(jnp.float32), W).reshape(1, W * Cout)
    b1 = jnp.tile(beta1.astype(jnp.float32), W).reshape(1, W * Cout)
    g2 = jnp.tile(gamma2.astype(jnp.float32), W).reshape(1, W * Cout)
    b2 = jnp.tile(beta2.astype(jnp.float32), W).reshape(1, W * Cout)

    kernel = functools.partial(conv_block_kernel,
                               inv_count=1.0 / float(N * H * W),
                               eps=float(eps))
    vmem = pl.BlockSpec(memory_space=pltpu.MemorySpace.VMEM)

    # Faithful MAC count: conv taps (+ row-shift matmuls), BN stats, pool.
    NH, WCi, WCo = N * H, W * Cin, W * Cout
    conv1_macs = NH * WCi * WCo + 2 * (NH * NH * WCi + NH * WCi * WCo)
    conv2_macs = NH * WCo * WCo + 2 * (NH * NH * WCo + NH * WCo * WCo)
    bn_macs = 2 * (2 * 8 * WCo * WCo)
    pool_macs = (NH // 2) * NH * WCo + (NH // 2) * WCo * WCo
    in_bytes = 4 * (x2d.size + w1b.size + w2b.size + smats.size + gmat.size +
                    pw.size + ph.size + 4 * WCo)
    out_bytes = 4 * (NH // 2) * WCo
    cost = pl.CostEstimate(
        flops=2 * (conv1_macs + conv2_macs + bn_macs + pool_macs),
        transcendentals=2 * WCo,
        bytes_accessed=in_bytes + out_bytes)

    out2d = pl.pallas_call(
        kernel,
        out_shape=jax.ShapeDtypeStruct((NH // 2, WCo), jnp.float32),
        in_specs=[vmem] * 11,
        out_specs=vmem,
        cost_estimate=cost,
    )(x2d, w1b, w2b, smats, gmat, pw, ph, g1, b1, g2, b2)

    # lane-dense slab -> NCHW to match the PyTorch output convention (glue)
    out = out2d[:, :(W // 2) * Cout].reshape(N, H // 2, W // 2, Cout)
    return jnp.transpose(out, (0, 3, 1, 2))


# ----------------------------------------------------------------------------
# Pure-JAX reference (for correctness check only)
# ----------------------------------------------------------------------------
def conv_block_reference(x_nchw, w1_oihw, w2_oihw, gamma1, beta1, gamma2, beta2,
                         eps):
    x = jnp.transpose(x_nchw, (0, 2, 3, 1)).astype(jnp.float32)
    w1 = jnp.transpose(w1_oihw, (2, 3, 1, 0)).astype(jnp.float32)
    w2 = jnp.transpose(w2_oihw, (2, 3, 1, 0)).astype(jnp.float32)
    dn = ('NHWC', 'HWIO', 'NHWC')

    def bn_relu(y, g, b):
        mean = jnp.mean(y, axis=(0, 1, 2), keepdims=True)
        var = jnp.mean((y - mean) ** 2, axis=(0, 1, 2), keepdims=True)
        y = (y - mean) * jax.lax.rsqrt(var + eps) * g + b
        return jnp.maximum(y, 0.0)

    y = jax.lax.conv_general_dilated(x, w1, (1, 1), [(1, 1), (1, 1)],
                                     dimension_numbers=dn)
    y = bn_relu(y, gamma1, beta1)
    y = jax.lax.conv_general_dilated(y, w2, (1, 1), [(1, 1), (1, 1)],
                                     dimension_numbers=dn)
    y = bn_relu(y, gamma2, beta2)
    N, H, W, C = y.shape
    y = y.reshape(N, H // 2, 2, W // 2, 2, C).mean(axis=(2, 4))
    return jnp.transpose(y, (0, 3, 1, 2))


# ----------------------------------------------------------------------------
# Deterministic parameter init (matches module __init__ semantics)
# ----------------------------------------------------------------------------
def xavier_uniform_conv(key, out_ch, in_ch, kh, kw):
    fan_in = in_ch * kh * kw
    fan_out = out_ch * kh * kw
    bound = (6.0 / (fan_in + fan_out)) ** 0.5
    return jax.random.uniform(key, (out_ch, in_ch, kh, kw),
                              minval=-bound, maxval=bound, dtype=jnp.float32)


if __name__ == "__main__":
    N, Cin, Cout, H, W = 2, 4, 8, 16, 16
    momentum = 0.01  # -> becomes BatchNorm eps due to positional-arg usage

    key = jax.random.PRNGKey(0)
    kx, k1, k2 = jax.random.split(key, 3)

    x = jax.random.normal(kx, (N, Cin, H, W), dtype=jnp.float32)
    w1 = xavier_uniform_conv(k1, Cout, Cin, 3, 3)   # conv1.weight (OIHW)
    w2 = xavier_uniform_conv(k2, Cout, Cout, 3, 3)  # conv2.weight (OIHW)
    gamma1 = jnp.ones((Cout,), jnp.float32)         # bn1.weight
    beta1 = jnp.zeros((Cout,), jnp.float32)         # bn1.bias
    gamma2 = jnp.ones((Cout,), jnp.float32)         # bn2.weight
    beta2 = jnp.zeros((Cout,), jnp.float32)         # bn2.bias

    out = conv_block_forward(x, w1, w2, gamma1, beta1, gamma2, beta2, momentum)
    out = jax.block_until_ready(out)

    ref = conv_block_reference(x, w1, w2, gamma1, beta1, gamma2, beta2,
                               momentum)
    assert out.shape == (N, Cout, H // 2, W // 2), out.shape
    assert jnp.allclose(out, ref, rtol=1e-4, atol=3e-4), \
        float(jnp.max(jnp.abs(out - ref)))

    print("KERNEL_OK")
</pallas_src>

<mosaic_0001>
module attributes {stable_mosaic.version = 11 : i64} {
  func.func @conv_block_kernel(%arg0: memref<32x64xf32, #tpu.memory_space<vmem>>, %arg1: memref<3x64x128xf32, #tpu.memory_space<vmem>>, %arg2: memref<3x128x128xf32, #tpu.memory_space<vmem>>, %arg3: memref<3x32x32xf32, #tpu.memory_space<vmem>>, %arg4: memref<128x128xf32, #tpu.memory_space<vmem>>, %arg5: memref<128x128xf32, #tpu.memory_space<vmem>>, %arg6: memref<16x32xf32, #tpu.memory_space<vmem>>, %arg7: memref<1x128xf32, #tpu.memory_space<vmem>>, %arg8: memref<1x128xf32, #tpu.memory_space<vmem>>, %arg9: memref<1x128xf32, #tpu.memory_space<vmem>>, %arg10: memref<1x128xf32, #tpu.memory_space<vmem>>, %arg11: memref<16x128xf32, #tpu.memory_space<vmem>>) attributes {dimension_semantics = [], scalar_prefetch = 0 : i64, scratch_operands = 0 : i64, tpu.core_type = #tpu.core_type<tc>} {
    %c0 = arith.constant 0 : index
    %c0_0 = arith.constant 0 : index
    %0 = vector.load %arg0[%c0, %c0_0] : memref<32x64xf32, #tpu.memory_space<vmem>>, vector<32x64xf32>
    %c1 = arith.constant 1 : index
    %c0_1 = arith.constant 0 : index
    %c0_2 = arith.constant 0 : index
    %1 = vector.load %arg1[%c1, %c0_1, %c0_2] : memref<3x64x128xf32, #tpu.memory_space<vmem>>, vector<1x64x128xf32>
    %2 = vector.shape_cast %1 : vector<1x64x128xf32> to vector<64x128xf32>
    %cst = arith.constant dense<0.000000e+00> : vector<32x128xf32>
    %3 = tpu.matmul %0, %2, %cst {dimension_numbers = #tpu.dot_dimension_numbers<[1], [0], [0], [1], [0, 0, 1, 1], [], []>} : vector<32x64xf32>, vector<64x128xf32>, vector<32x128xf32> -> vector<32x128xf32>
    %c0_3 = arith.constant 0 : index
    %c0_4 = arith.constant 0 : index
    %c0_5 = arith.constant 0 : index
    %4 = vector.load %arg3[%c0_3, %c0_4, %c0_5] : memref<3x32x32xf32, #tpu.memory_space<vmem>>, vector<1x32x32xf32>
    %5 = vector.shape_cast %4 : vector<1x32x32xf32> to vector<32x32xf32>
    %cst_6 = arith.constant dense<0.000000e+00> : vector<32x64xf32>
    %6 = tpu.matmul %5, %0, %cst_6 {dimension_numbers = #tpu.dot_dimension_numbers<[1], [0], [0], [1], [0, 0, 1, 1], [], []>} : vector<32x32xf32>, vector<32x64xf32>, vector<32x64xf32> -> vector<32x64xf32>
    %c0_7 = arith.constant 0 : index
    %c0_8 = arith.constant 0 : index
    %c0_9 = arith.constant 0 : index
    %7 = vector.load %arg1[%c0_7, %c0_8, %c0_9] : memref<3x64x128xf32, #tpu.memory_space<vmem>>, vector<1x64x128xf32>
    %8 = vector.shape_cast %7 : vector<1x64x128xf32> to vector<64x128xf32>
    %cst_10 = arith.constant dense<0.000000e+00> : vector<32x128xf32>
    %9 = tpu.matmul %6, %8, %cst_10 {dimension_numbers = #tpu.dot_dimension_numbers<[1], [0], [0], [1], [0, 0, 1, 1], [], []>} : vector<32x64xf32>, vector<64x128xf32>, vector<32x128xf32> -> vector<32x128xf32>
    %10 = arith.addf %3, %9 : vector<32x128xf32>
    %c2 = arith.constant 2 : index
    %c0_11 = arith.constant 0 : index
    %c0_12 = arith.constant 0 : index
    %11 = vector.load %arg3[%c2, %c0_11, %c0_12] : memref<3x32x32xf32, #tpu.memory_space<vmem>>, vector<1x32x32xf32>
    %12 = vector.shape_cast %11 : vector<1x32x32xf32> to vector<32x32xf32>
    %cst_13 = arith.constant dense<0.000000e+00> : vector<32x64xf32>
    %13 = tpu.matmul %12, %0, %cst_13 {dimension_numbers = #tpu.dot_dimension_numbers<[1], [0], [0], [1], [0, 0, 1, 1], [], []>} : vector<32x32xf32>, vector<32x64xf32>, vector<32x64xf32> -> vector<32x64xf32>
    %c2_14 = arith.constant 2 : index
    %c0_15 = arith.constant 0 : index
    %c0_16 = arith.constant 0 : index
    %14 = vector.load %arg1[%c2_14, %c0_15, %c0_16] : memref<3x64x128xf32, #tpu.memory_space<vmem>>, vector<1x64x128xf32>
    %15 = vector.shape_cast %14 : vector<1x64x128xf32> to vector<64x128xf32>
    %cst_17 = arith.constant dense<0.000000e+00> : vector<32x128xf32>
    %16 = tpu.matmul %13, %15, %cst_17 {dimension_numbers = #tpu.dot_dimension_numbers<[1], [0], [0], [1], [0, 0, 1, 1], [], []>} : vector<32x64xf32>, vector<64x128xf32>, vector<32x128xf32> -> vector<32x128xf32>
    %17 = arith.addf %10, %16 : vector<32x128xf32>
    %c0_18 = arith.constant 0 : index
    %c0_19 = arith.constant 0 : index
    %18 = vector.load %arg7[%c0_18, %c0_19] : memref<1x128xf32, #tpu.memory_space<vmem>>, vector<1x128xf32>
    %c0_20 = arith.constant 0 : index
    %c0_21 = arith.constant 0 : index
    %19 = vector.load %arg8[%c0_20, %c0_21] : memref<1x128xf32, #tpu.memory_space<vmem>>, vector<1x128xf32>
    %c0_22 = arith.constant 0 : index
    %c0_23 = arith.constant 0 : index
    %20 = vector.load %arg4[%c0_22, %c0_23] : memref<128x128xf32, #tpu.memory_space<vmem>>, vector<128x128xf32>
    %21 = vector.extract_strided_slice %17 {offsets = [0, 0], sizes = [8, 128], strides = [1, 1]} : vector<32x128xf32> to vector<8x128xf32>
    %22 = vector.extract_strided_slice %17 {offsets = [8, 0], sizes = [8, 128], strides = [1, 1]} : vector<32x128xf32> to vector<8x128xf32>
    %23 = arith.addf %21, %22 : vector<8x128xf32>
    %24 = vector.extract_strided_slice %17 {offsets = [16, 0], sizes = [8, 128], strides = [1, 1]} : vector<32x128xf32> to vector<8x128xf32>
    %25 = arith.addf %23, %24 : vector<8x128xf32>
    %26 = vector.extract_strided_slice %17 {offsets = [24, 0], sizes = [8, 128], strides = [1, 1]} : vector<32x128xf32> to vector<8x128xf32>
    %27 = arith.addf %25, %26 : vector<8x128xf32>
    %cst_24 = arith.constant dense<0.000000e+00> : vector<8x128xf32>
    %28 = tpu.matmul %27, %20, %cst_24 {dimension_numbers = #tpu.dot_dimension_numbers<[1], [0], [0], [1], [0, 0, 1, 1], [], []>} : vector<8x128xf32>, vector<128x128xf32>, vector<8x128xf32> -> vector<8x128xf32>
    %29 = arith.mulf %17, %17 : vector<32x128xf32>
    %30 = vector.extract_strided_slice %29 {offsets = [0, 0], sizes = [8, 128], strides = [1, 1]} : vector<32x128xf32> to vector<8x128xf32>
    %31 = vector.extract_strided_slice %29 {offsets = [8, 0], sizes = [8, 128], strides = [1, 1]} : vector<32x128xf32> to vector<8x128xf32>
    %32 = arith.addf %30, %31 : vector<8x128xf32>
    %33 = vector.extract_strided_slice %29 {offsets = [16, 0], sizes = [8, 128], strides = [1, 1]} : vector<32x128xf32> to vector<8x128xf32>
    %34 = arith.addf %32, %33 : vector<8x128xf32>
    %35 = vector.extract_strided_slice %29 {offsets = [24, 0], sizes = [8, 128], strides = [1, 1]} : vector<32x128xf32> to vector<8x128xf32>
    %36 = arith.addf %34, %35 : vector<8x128xf32>
    %cst_25 = arith.constant dense<0.000000e+00> : vector<8x128xf32>
    %37 = tpu.matmul %36, %20, %cst_25 {dimension_numbers = #tpu.dot_dimension_numbers<[1], [0], [0], [1], [0, 0, 1, 1], [], []>} : vector<8x128xf32>, vector<128x128xf32>, vector<8x128xf32> -> vector<8x128xf32>
    %cst_26 = arith.constant dense<0.000000e+00> : vector<128xf32>
    %38 = vector.multi_reduction <add>, %28, %cst_26 [0] : vector<8x128xf32> to vector<128xf32>
    %39 = vector.shape_cast %38 : vector<128xf32> to vector<1x128xf32>
    %cst_27 = arith.constant 0.001953125 : f32
    %40 = vector.broadcast %cst_27 : f32 to vector<1x128xf32>
    %41 = arith.mulf %39, %40 : vector<1x128xf32>
    %cst_28 = arith.constant dense<0.000000e+00> : vector<128xf32>
    %42 = vector.multi_reduction <add>, %37, %cst_28 [0] : vector<8x128xf32> to vector<128xf32>
    %43 = vector.shape_cast %42 : vector<128xf32> to vector<1x128xf32>
    %cst_29 = arith.constant 0.001953125 : f32
    %44 = vector.broadcast %cst_29 : f32 to vector<1x128xf32>
    %45 = arith.mulf %43, %44 : vector<1x128xf32>
    %46 = arith.mulf %41, %41 : vector<1x128xf32>
    %47 = arith.subf %45, %46 : vector<1x128xf32>
    %48 = vector.broadcast %41 : vector<1x128xf32> to vector<32x128xf32>
    %49 = arith.subf %17, %48 : vector<32x128xf32>
    %cst_30 = arith.constant 0.00999999977 : f32
    %50 = vector.broadcast %cst_30 : f32 to vector<1x128xf32>
    %51 = arith.addf %47, %50 : vector<1x128xf32>
    %52 = math.rsqrt %51 : vector<1x128xf32>
    %53 = vector.broadcast %52 : vector<1x128xf32> to vector<32x128xf32>
    %54 = arith.mulf %49, %53 : vector<32x128xf32>
    %55 = vector.broadcast %18 : vector<1x128xf32> to vector<32x128xf32>
    %56 = arith.mulf %54, %55 : vector<32x128xf32>
    %57 = vector.broadcast %19 : vector<1x128xf32> to vector<32x128xf32>
    %58 = arith.addf %56, %57 : vector<32x128xf32>
    %cst_31 = arith.constant 0.000000e+00 : f32
    %59 = vector.broadcast %cst_31 : f32 to vector<32x128xf32>
    %60 = arith.maximumf %58, %59 : vector<32x128xf32>
    %c1_32 = arith.constant 1 : index
    %c0_33 = arith.constant 0 : index
    %c0_34 = arith.constant 0 : index
    %61 = vector.load %arg2[%c1_32, %c0_33, %c0_34] : memref<3x128x128xf32, #tpu.memory_space<vmem>>, vector<1x128x128xf32>
    %62 = vector.shape_cast %61 : vector<1x128x128xf32> to vector<128x128xf32>
    %cst_35 = arith.constant dense<0.000000e+00> : vector<32x128xf32>
    %63 = tpu.matmul %60, %62, %cst_35 {dimension_numbers = #tpu.dot_dimension_numbers<[1], [0], [0], [1], [0, 0, 1, 1], [], []>} : vector<32x128xf32>, vector<128x128xf32>, vector<32x128xf32> -> vector<32x128xf32>
    %c0_36 = arith.constant 0 : index
    %c0_37 = arith.constant 0 : index
    %c0_38 = arith.constant 0 : index
    %64 = vector.load %arg3[%c0_36, %c0_37, %c0_38] : memref<3x32x32xf32, #tpu.memory_space<vmem>>, vector<1x32x32xf32>
    %65 = vector.shape_cast %64 : vector<1x32x32xf32> to vector<32x32xf32>
    %cst_39 = arith.constant dense<0.000000e+00> : vector<32x128xf32>
    %66 = tpu.matmul %65, %60, %cst_39 {dimension_numbers = #tpu.dot_dimension_numbers<[1], [0], [0], [1], [0, 0, 1, 1], [], []>} : vector<32x32xf32>, vector<32x128xf32>, vector<32x128xf32> -> vector<32x128xf32>
    %c0_40 = arith.constant 0 : index
    %c0_41 = arith.constant 0 : index
    %c0_42 = arith.constant 0 : index
    %67 = vector.load %arg2[%c0_40, %c0_41, %c0_42] : memref<3x128x128xf32, #tpu.memory_space<vmem>>, vector<1x128x128xf32>
    %68 = vector.shape_cast %67 : vector<1x128x128xf32> to vector<128x128xf32>
    %cst_43 = arith.constant dense<0.000000e+00> : vector<32x128xf32>
    %69 = tpu.matmul %66, %68, %cst_43 {dimension_numbers = #tpu.dot_dimension_numbers<[1], [0], [0], [1], [0, 0, 1, 1], [], []>} : vector<32x128xf32>, vector<128x128xf32>, vector<32x128xf32> -> vector<32x128xf32>
    %70 = arith.addf %63, %69 : vector<32x128xf32>
    %c2_44 = arith.constant 2 : index
    %c0_45 = arith.constant 0 : index
    %c0_46 = arith.constant 0 : index
    %71 = vector.load %arg3[%c2_44, %c0_45, %c0_46] : memref<3x32x32xf32, #tpu.memory_space<vmem>>, vector<1x32x32xf32>
    %72 = vector.shape_cast %71 : vector<1x32x32xf32> to vector<32x32xf32>
    %cst_47 = arith.constant dense<0.000000e+00> : vector<32x128xf32>
    %73 = tpu.matmul %72, %60, %cst_47 {dimension_numbers = #tpu.dot_dimension_numbers<[1], [0], [0], [1], [0, 0, 1, 1], [], []>} : vector<32x32xf32>, vector<32x128xf32>, vector<32x128xf32> -> vector<32x128xf32>
    %c2_48 = arith.constant 2 : index
    %c0_49 = arith.constant 0 : index
    %c0_50 = arith.constant 0 : index
    %74 = vector.load %arg2[%c2_48, %c0_49, %c0_50] : memref<3x128x128xf32, #tpu.memory_space<vmem>>, vector<1x128x128xf32>
    %75 = vector.shape_cast %74 : vector<1x128x128xf32> to vector<128x128xf32>
    %cst_51 = arith.constant dense<0.000000e+00> : vector<32x128xf32>
    %76 = tpu.matmul %73, %75, %cst_51 {dimension_numbers = #tpu.dot_dimension_numbers<[1], [0], [0], [1], [0, 0, 1, 1], [], []>} : vector<32x128xf32>, vector<128x128xf32>, vector<32x128xf32> -> vector<32x128xf32>
    %77 = arith.addf %70, %76 : vector<32x128xf32>
    %c0_52 = arith.constant 0 : index
    %c0_53 = arith.constant 0 : index
    %78 = vector.load %arg9[%c0_52, %c0_53] : memref<1x128xf32, #tpu.memory_space<vmem>>, vector<1x128xf32>
    %c0_54 = arith.constant 0 : index
    %c0_55 = arith.constant 0 : index
    %79 = vector.load %arg10[%c0_54, %c0_55] : memref<1x128xf32, #tpu.memory_space<vmem>>, vector<1x128xf32>
    %c0_56 = arith.constant 0 : index
    %c0_57 = arith.constant 0 : index
    %80 = vector.load %arg4[%c0_56, %c0_57] : memref<128x128xf32, #tpu.memory_space<vmem>>, vector<128x128xf32>
    %81 = vector.extract_strided_slice %77 {offsets = [0, 0], sizes = [8, 128], strides = [1, 1]} : vector<32x128xf32> to vector<8x128xf32>
    %82 = vector.extract_strided_slice %77 {offsets = [8, 0], sizes = [8, 128], strides = [1, 1]} : vector<32x128xf32> to vector<8x128xf32>
    %83 = arith.addf %81, %82 : vector<8x128xf32>
    %84 = vector.extract_strided_slice %77 {offsets = [16, 0], sizes = [8, 128], strides = [1, 1]} : vector<32x128xf32> to vector<8x128xf32>
    %85 = arith.addf %83, %84 : vector<8x128xf32>
    %86 = vector.extract_strided_slice %77 {offsets = [24, 0], sizes = [8, 128], strides = [1, 1]} : vector<32x128xf32> to vector<8x128xf32>
    %87 = arith.addf %85, %86 : vector<8x128xf32>
    %cst_58 = arith.constant dense<0.000000e+00> : vector<8x128xf32>
    %88 = tpu.matmul %87, %80, %cst_58 {dimension_numbers = #tpu.dot_dimension_numbers<[1], [0], [0], [1], [0, 0, 1, 1], [], []>} : vector<8x128xf32>, vector<128x128xf32>, vector<8x128xf32> -> vector<8x128xf32>
    %89 = arith.mulf %77, %77 : vector<32x128xf32>
    %90 = vector.extract_strided_slice %89 {offsets = [0, 0], sizes = [8, 128], strides = [1, 1]} : vector<32x128xf32> to vector<8x128xf32>
    %91 = vector.extract_strided_slice %89 {offsets = [8, 0], sizes = [8, 128], strides = [1, 1]} : vector<32x128xf32> to vector<8x128xf32>
    %92 = arith.addf %90, %91 : vector<8x128xf32>
    %93 = vector.extract_strided_slice %89 {offsets = [16, 0], sizes = [8, 128], strides = [1, 1]} : vector<32x128xf32> to vector<8x128xf32>
    %94 = arith.addf %92, %93 : vector<8x128xf32>
    %95 = vector.extract_strided_slice %89 {offsets = [24, 0], sizes = [8, 128], strides = [1, 1]} : vector<32x128xf32> to vector<8x128xf32>
    %96 = arith.addf %94, %95 : vector<8x128xf32>
    %cst_59 = arith.constant dense<0.000000e+00> : vector<8x128xf32>
    %97 = tpu.matmul %96, %80, %cst_59 {dimension_numbers = #tpu.dot_dimension_numbers<[1], [0], [0], [1], [0, 0, 1, 1], [], []>} : vector<8x128xf32>, vector<128x128xf32>, vector<8x128xf32> -> vector<8x128xf32>
    %cst_60 = arith.constant dense<0.000000e+00> : vector<128xf32>
    %98 = vector.multi_reduction <add>, %88, %cst_60 [0] : vector<8x128xf32> to vector<128xf32>
    %99 = vector.shape_cast %98 : vector<128xf32> to vector<1x128xf32>
    %cst_61 = arith.constant 0.001953125 : f32
    %100 = vector.broadcast %cst_61 : f32 to vector<1x128xf32>
    %101 = arith.mulf %99, %100 : vector<1x128xf32>
    %cst_62 = arith.constant dense<0.000000e+00> : vector<128xf32>
    %102 = vector.multi_reduction <add>, %97, %cst_62 [0] : vector<8x128xf32> to vector<128xf32>
    %103 = vector.shape_cast %102 : vector<128xf32> to vector<1x128xf32>
    %cst_63 = arith.constant 0.001953125 : f32
    %104 = vector.broadcast %cst_63 : f32 to vector<1x128xf32>
    %105 = arith.mulf %103, %104 : vector<1x128xf32>
    %106 = arith.mulf %101, %101 : vector<1x128xf32>
    %107 = arith.subf %105, %106 : vector<1x128xf32>
    %108 = vector.broadcast %101 : vector<1x128xf32> to vector<32x128xf32>
    %109 = arith.subf %77, %108 : vector<32x128xf32>
    %cst_64 = arith.constant 0.00999999977 : f32
    %110 = vector.broadcast %cst_64 : f32 to vector<1x128xf32>
    %111 = arith.addf %107, %110 : vector<1x128xf32>
    %112 = math.rsqrt %111 : vector<1x128xf32>
    %113 = vector.broadcast %112 : vector<1x128xf32> to vector<32x128xf32>
    %114 = arith.mulf %109, %113 : vector<32x128xf32>
    %115 = vector.broadcast %78 : vector<1x128xf32> to vector<32x128xf32>
    %116 = arith.mulf %114, %115 : vector<32x128xf32>
    %117 = vector.broadcast %79 : vector<1x128xf32> to vector<32x128xf32>
    %118 = arith.addf %116, %117 : vector<32x128xf32>
    %cst_65 = arith.constant 0.000000e+00 : f32
    %119 = vector.broadcast %cst_65 : f32 to vector<32x128xf32>
    %120 = arith.maximumf %118, %119 : vector<32x128xf32>
    %c0_66 = arith.constant 0 : index
    %c0_67 = arith.constant 0 : index
    %121 = vector.load %arg6[%c0_66, %c0_67] : memref<16x32xf32, #tpu.memory_space<vmem>>, vector<16x32xf32>
    %cst_68 = arith.constant dense<0.000000e+00> : vector<16x128xf32>
    %122 = tpu.matmul %121, %120, %cst_68 {dimension_numbers = #tpu.dot_dimension_numbers<[1], [0], [0], [1], [0, 0, 1, 1], [], []>} : vector<16x32xf32>, vector<32x128xf32>, vector<16x128xf32> -> vector<16x128xf32>
    %c0_69 = arith.constant 0 : index
    %c0_70 = arith.constant 0 : index
    %123 = vector.load %arg5[%c0_69, %c0_70] : memref<128x128xf32, #tpu.memory_space<vmem>>, vector<128x128xf32>
    %cst_71 = arith.constant dense<0.000000e+00> : vector<16x128xf32>
    %124 = tpu.matmul %122, %123, %cst_71 {dimension_numbers = #tpu.dot_dimension_numbers<[1], [0], [0], [1], [0, 0, 1, 1], [], []>} : vector<16x128xf32>, vector<128x128xf32>, vector<16x128xf32> -> vector<16x128xf32>
    %c0_72 = arith.constant 0 : index
    %c0_73 = arith.constant 0 : index
    %125 = vector.load %arg11[%c0_72, %c0_73] : memref<16x128xf32, #tpu.memory_space<vmem>>, vector<16x128xf32>
    tpu.vector_store %arg11[%c0_72, %c0_73], %124 {strides = array<i32>} : memref<16x128xf32, #tpu.memory_space<vmem>>, vector<16x128xf32>,
    return
  }
}

</mosaic_0001>

<bundles_post_ra>
// kernel: tpu_custom_call.1
= control target key start
LH: loop header
LB: loop body
LE: loop exit
PB: predicated region body
PF: predicated region fallthrough
CT: control target
= control target key end

     0   :  { %16 = vsyncpa [#allocation3], 0  ;;  %s1512_s0 = inlined_call_operand.hbm [shape: f32[32,64], index: 0, kind: input, shape index: {}]   ;;  %s1513_s1 = inlined_call_operand.hbm [shape: f32[3,64,128], index: 1, kind: input, shape index: {}]   ;;  %s1514_s2 = inlined_call_operand.hbm [shape: f32[3,128,128], index: 2, kind: input, shape index: {}]   ;;  %s1515_s3 = inlined_call_operand.hbm [shape: f32[3,32,32], index: 3, kind: input, shape index: {}]   ;;  %s1516_s4 = inlined_call_operand.hbm [shape: f32[128,128], index: 4, kind: input, shape index: {}]   ;;  %s1517_s5 = inlined_call_operand.hbm [shape: f32[128,128], index: 5, kind: input, shape index: {}]   ;;  %s1518_s6 = inlined_call_operand.hbm [shape: f32[16,32], index: 6, kind: input, shape index: {}]   ;;  %s1519_s7 = inlined_call_operand.vmem [shape: f32[1,128], index: 7, kind: input, shape index: {}]   ;;  %s1520_s8 = inlined_call_operand.vmem [shape: f32[1,128], index: 8, kind: input, shape index: {}]   ;;  %s1521_s9 = inlined_call_operand.vmem [shape: f32[1,128], index: 9, kind: input, shape index: {}]   ;;  %s1522_s10 = inlined_call_operand.vmem [shape: f32[1,128], index: 10, kind: input, shape index: {}]   ;;  %s1523_s11 = inlined_call_operand.hbm [shape: f32[16,128], index: 11, kind: output, shape index: {}]  }
   0x1   :  { %17 = vsyncpa [#allocation6], 0 }
   0x2   :  { %18 = vsyncpa [#allocation9], 0 }
   0x3   :  { %19 = vsyncpa [#allocation12], 0 }
   0x4   :  { %20 = vsyncpa [#allocation4], 0  ;;  %s38_s19 = sshll.u32 %s1513_s1, 4  ;;  %s1167_s20 = smov [#allocation5]   ;;  %s39_s19 = int_to_ptr.hbm [resolvable:$true] %s38_s19 }
   0x5   :  { %s40_s21 = sshll.u32 %s1167_s20, 4  ;;  %s64_s24 = sshll.u32 %s1515_s3, 4  ;;  %s41_s21 = int_to_ptr.vmem [resolvable:$true] %s40_s21  ;;  %s65_s24 = int_to_ptr.hbm [resolvable:$true] %s64_s24 }
   0x6   :  { %s1168_s25 = smov 128   ;;  %s1169_s26 = smov 8  }
   0x7   :  { %46 = dma.hbm_to_vmem [thread:$0]  %s39_s19, 3072, %s41_s21, [#allocation6], %s1168_s25, %s1168_s25, %s1169_s26  }
   0x8   :  { %s1170_s27 = smov [#allocation8]   ;;  %s90_s1 = sshll.u32 %s1517_s5, 4  ;;  %s91_s1 = int_to_ptr.hbm [resolvable:$true] %s90_s1 }
   0x9   :  { %s66_s28 = sshll.u32 %s1170_s27, 4  ;;  %s25_s13 = sshll.u32 %s1512_s0, 4  ;;  %s67_s28 = int_to_ptr.vmem [resolvable:$true] %s66_s28  ;;  %s26_s13 = int_to_ptr.hbm [resolvable:$true] %s25_s13 }
   0xa   :  { %72 = dma.hbm_to_vmem [thread:$0]  %s65_s24, 1536, %s67_s28, [#allocation9], %s1168_s25, %s1168_s25, %s1169_s26  }
   0xb   :  { %s1171_s14 = smov [#allocation11]   ;;  %s1172_s16 = smov [#allocation2]  }
   0xc   :  { %s92_s15 = sshll.u32 %s1171_s14, 4  ;;  %s27_s5 = sshll.u32 %s1172_s16, 4  ;;  %s93_s15 = int_to_ptr.vmem [resolvable:$true] %s92_s15  ;;  %s28_s5 = int_to_ptr.vmem [resolvable:$true] %s27_s5 }
   0xd   :  { %98 = dma.hbm_to_vmem [thread:$0]  %s91_s1, 2048, %s93_s15, [#allocation12], %s1168_s25, %s1168_s25, %s1169_s26  }
   0xe   :  { %s51_s19 = sshll.u32 %s1514_s2, 4  ;;  %s77_s21 = sshll.u32 %s1516_s4, 4  ;;  %s52_s19 = int_to_ptr.hbm [resolvable:$true] %s51_s19  ;;  %s78_s21 = int_to_ptr.hbm [resolvable:$true] %s77_s21 }
   0xf   :  { %33 = dma.hbm_to_vmem [thread:$0]  %s26_s13, 512, %s28_s5, [#allocation3], %s1168_s25, %s1168_s25, %s1169_s26  }
  0x10   :  { %s1173_s22 = smov [#allocation7]   ;;  %s1174_s24 = smov [#allocation10]  }
  0x11   :  { %s53_s23 = sshll.u32 %s1173_s22, 4  ;;  %s79_s2 = sshll.u32 %s1174_s24, 4  ;;  %s54_s23 = int_to_ptr.vmem [resolvable:$true] %s53_s23  ;;  %s80_s2 = int_to_ptr.vmem [resolvable:$true] %s79_s2 }
  0x12   :  { %59 = dma.hbm_to_vmem [thread:$0]  %s52_s19, 6144, %s54_s23, [#allocation6], %s1168_s25, %s1168_s25, %s1169_s26  }
  0x13   :  { %s103_s29 = sshll.u32 %s1518_s6, 4  ;;  %s1175_s4 = smov [#allocation13]   ;;  %s104_s29 = int_to_ptr.hbm [resolvable:$true] %s103_s29 }
  0x14   :  { %85 = dma.hbm_to_vmem [thread:$0]  %s78_s21, 2048, %s80_s2, [#allocation9], %s1168_s25, %s1168_s25, %s1169_s26  }
  0x15   :  { %s105_s30 = sshll.u32 %s1175_s4, 4  ;;  %s106_s30 = int_to_ptr.vmem [resolvable:$true] %s105_s30 }
  0x16   :  { %111 = dma.hbm_to_vmem [thread:$0]  %s104_s29, 256, %s106_s30, [#allocation12], %s1168_s25, %s1168_s25, %s1169_s26  }
  0x17   :  { %1157 = dma.done.wait [#allocation3], 512  }
  0x18   :  { %1158 = vsyncadd [#allocation3], 4294966784 }
  0x19   :  { %1159 = dma.done.wait [#allocation6], 9216  }
  0x1a   :  { %1160 = vsyncadd [#allocation6], 4294958080 }
  0x1b   :  { %1161 = dma.done.wait [#allocation9], 3584  }
  0x1c   :  { %1162 = vsyncadd [#allocation9], 4294963712 }
  0x1d   :  { %1163 = dma.done.wait [#allocation12], 2304  }
  0x1e   :  { %1164 = vsyncadd [#allocation12], 4294964992  ;;  %v1279_v0 = vld [vmem:[#allocation2 + $0x18] sm:$0xff]  ;;  %v1281_v1 = vld [vmem:[#allocation2 + $0x10] sm:$0xff]  ;;  %vm165_vm0 = vcmask 261120   ;;  %vm215_vm1 = vcmask 523264  }
  0x1f   :  { %327 = vmatpush.msra.mxu3 %v1279_v0  ;;  %190 = vmatpush.msra.mxu0 %v1279_v0  ;;  %v1285_v2 = vld [vmem:[#allocation2 + $0x8] sm:$0xff]  ;;  %v148_v3 = vld [vmem:[#allocation2] sm:$0xff]  ;;  %v160_v4 = vld [vmem:[#allocation5 + $0x78] sm:$0xff]  ;;  %s901_s5 = sshll.u32 %s1523_s11, 4  ;;  %s902_s5 = int_to_ptr.hbm [resolvable:$true] %s901_s5 }
  0x20   :  { %v1290_v5 = vld [vmem:[#allocation8 + $0x40] sm:$0xff]  ;;  %v214_v7 = vld [vmem:[#allocation5 + $0x38] sm:$0xff]  ;;  %277 = vmatpush.msra.mxu2 %v160_v4  ;;  %v159_v8 = vld [vmem:[#allocation5 + $0x70] sm:$0xff] }
  0x21   :  { %328 = vmatpush.msra.mxu3 %v1281_v1  ;;  %191 = vmatpush.msra.mxu0 %v1281_v1  ;;  %v1293_v6 = vld [vmem:[#allocation8] sm:$0xff]  ;;  %v213_v9 = vld [vmem:[#allocation5 + $0x30] sm:$0xff]  ;;  %v352_v10 = vld [vmem:[#allocation5 + $0xb8] sm:$0xff] }
  0x22   :  { %236 = vmatpush.msra.mxu1 %v214_v7  ;;  %v158_v11 = vld [vmem:[#allocation5 + $0x68] sm:$0xff]  ;;  %278 = vmatpush.msra.mxu2 %v159_v8  ;;  %v351_v13 = vld [vmem:[#allocation5 + $0xb0] sm:$0xff]  ;;  %v157_v14 = vld [vmem:[#allocation5 + $0x60] sm:$0xff] }
  0x23   :  { %329 = vmatpush.msra.mxu3 %v1285_v2  ;;  %192 = vmatpush.msra.mxu0 %v1285_v2  ;;  %v212_v12 = vld [vmem:[#allocation5 + $0x28] sm:$0xff]  ;;  %v211_v15 = vld [vmem:[#allocation5 + $0x20] sm:$0xff]  ;;  %v156_v17 = vld [vmem:[#allocation5 + $0x58] sm:$0xff] }
  0x24   :  { %237 = vmatpush.msra.mxu1 %v213_v9  ;;  %v350_v16 = vld [vmem:[#allocation5 + $0xa8] sm:$0xff]  ;;  %279 = vmatpush.msra.mxu2 %v158_v11  ;;  %v210_v18 = vld [vmem:[#allocation5 + $0x18] sm:$0xff]  ;;  %v155_v21 = vld [vmem:[#allocation5 + $0x50] sm:$0xff] }
  0x25   :  { %330 = vmatpush.msra.mxu3 %v148_v3  ;;  %193 = vmatpush.msra.mxu0 %v148_v3  ;;  %v1299_v19 = vld [vmem:[#allocation8 + $0x48] sm:$0xff]  ;;  %v349_v22 = vld [vmem:[#allocation5 + $0xa0] sm:$0xff]  ;;  %v209_v23 = vld [vmem:[#allocation5 + $0x10] sm:$0xff] }
  0x26   :  { %929 = vmatmul.msk.f32.vlgmr.msra.gmra.mxu3 %vm165_vm0, %v1290_v5  ;;  %917 = vmatmul.msk.f32.vlgmr.msra.gmra.mxu0 %vm165_vm0, %v1293_v6  ;;  %v1301_v20 = vld [vmem:[#allocation8 + $0x8] sm:$0xff]  ;;  %v348_v25 = vld [vmem:[#allocation5 + $0x98] sm:$0xff]  ;;  %v153_v27 = vld [vmem:[#allocation5 + $0x40] sm:$0xff] }
  0x27   :  { %373 = vmatpush.msrb.mxu0 %v352_v10  ;;  %238 = vmatpush.msra.mxu1 %v212_v12  ;;  %v154_v24 = vld [vmem:[#allocation5 + $0x48] sm:$0xff]  ;;  %v347_v28 = vld [vmem:[#allocation5 + $0x90] sm:$0xff]  ;;  %v1316_v31 = vld [vmem:[#allocation8 + $0x58] sm:$0xff] }
  0x28   :  { %280 = vmatpush.msra.mxu2 %v157_v14  ;;  %v208_v26 = vld [vmem:[#allocation5 + $0x8] sm:$0xff]  ;;  %v1307_v29 = vld [vmem:[#allocation8 + $0x50] sm:$0xff]  ;;  %v1318_v32 = vld [vmem:[#allocation8 + $0x18] sm:$0xff] }
  0x29   :  { %374 = vmatpush.msrb.mxu0 %v351_v13  ;;  %239 = vmatpush.msra.mxu1 %v211_v15  ;;  %v1309_v30 = vld [vmem:[#allocation8 + $0x10] sm:$0xff]  ;;  %v207_v33 = vld [vmem:[#allocation5] sm:$0xff]  ;;  %v346_v34 = vld [vmem:[#allocation5 + $0x88] sm:$0xff] }
  0x2a   :  { %281 = vmatpush.msra.mxu2 %v156_v17  ;;  %v345_v35 = vld [vmem:[#allocation5 + $0x80] sm:$0xff]  ;;  %v1338_v44 = vld [vmem:[#allocation10 + $0x78] sm:$0xff]  ;;  %v1342_v45 = vld [vmem:[#allocation10 + $0x70] sm:$0xff] }
  0x2b   :  { %375 = vmatpush.msrb.mxu0 %v350_v16  ;;  %240 = vmatpush.msra.mxu1 %v210_v18  ;;  %v1346_v46 = vld [vmem:[#allocation10 + $0x68] sm:$0xff]  ;;  %v1350_v47 = vld [vmem:[#allocation10 + $0x60] sm:$0xff]  ;;  %v1352_v48 = vld [vmem:[#allocation10 + $0x58] sm:$0xff] }
  0x2c   :  { %282 = vmatpush.msra.mxu2 %v155_v21  ;;  %419 = vmatpush.msrb.mxu3 %v1338_v44  ;;  %v1358_v49 = vld [vmem:[#allocation10 + $0x50] sm:$0xff]  ;;  %v1362_v50 = vld [vmem:[#allocation10 + $0x48] sm:$0xff]  ;;  %v1366_v51 = vld [vmem:[#allocation10 + $0x40] sm:$0xff] }
  0x2d   :  { %376 = vmatpush.msrb.mxu0 %v349_v22  ;;  %241 = vmatpush.msra.mxu1 %v209_v23  ;;  %v1370_v52 = vld [vmem:[#allocation10 + $0x38] sm:$0xff]  ;;  %v1374_v53 = vld [vmem:[#allocation10 + $0x30] sm:$0xff]  ;;  %v1378_v54 = vld [vmem:[#allocation10 + $0x28] sm:$0xff] }
  0x2e   :  { %930 = vmatmul.msk.f32.gmra.mxu3 %vm165_vm0, %v1299_v19  ;;  %918 = vmatmul.msk.f32.gmra.mxu0 %vm165_vm0, %v1301_v20  ;;  %v1382_v55 = vld [vmem:[#allocation10 + $0x20] sm:$0xff]  ;;  %v1384_v56 = vld [vmem:[#allocation10 + $0x18] sm:$0xff]  ;;  %v1390_v58 = vld [vmem:[#allocation10 + $0x10] sm:$0xff] }
  0x2f   :  { %283 = vmatpush.msra.mxu2 %v154_v24  ;;  %377 = vmatpush.msrb.mxu0 %v348_v25  ;;  %v1394_v59 = vld [vmem:[#allocation10 + $0x8] sm:$0xff]  ;;  %v1398_v61 = vld [vmem:[#allocation10] sm:$0xff] }
  0x30   :  { %242 = vmatpush.msra.mxu1 %v208_v26  ;;  %420 = vmatpush.msrb.mxu3 %v1342_v45 }
  0x31   :  { %284 = vmatpush.msra.mxu2 %v153_v27  ;;  %378 = vmatpush.msrb.mxu0 %v347_v28 }
  0x32   :  { %925 = vmatmul.msk.f32.vlgmr.msra.gmra.mxu2 %vm215_vm1, %v148_v3  ;;  %243 = vmatpush.msra.mxu1 %v207_v33 }
  0x33   :  { %379 = vmatpush.msrb.mxu0 %v346_v34  ;;  %421 = vmatpush.msrb.mxu3 %v1346_v46  ;;  %v535_v34 = vld [vmem:[#allocation7 + $0xf8] sm:$0xff] }
  0x34   :  { %446 = vmatpush.msrb.mxu1 %v1338_v44 }
  0x35   :  { %380 = vmatpush.msrb.mxu0 %v345_v35  ;;  %422 = vmatpush.msrb.mxu3 %v1350_v47  ;;  %v534_v35 = vld [vmem:[#allocation7 + $0xf0] sm:$0xff] }
  0x36   :  { %931 = vmatmul.msk.f32.gmra.mxu3 %vm165_vm0, %v1307_v29  ;;  %919 = vmatmul.msk.f32.gmra.mxu0 %vm165_vm0, %v1309_v30 }
  0x37   :  { %447 = vmatpush.msrb.mxu1 %v1342_v45  ;;  %423 = vmatpush.msrb.mxu3 %v1352_v48 }
  0x39   :  { %448 = vmatpush.msrb.mxu1 %v1346_v46  ;;  %424 = vmatpush.msrb.mxu3 %v1358_v49 }
  0x3a   :  { %926 = vmatmul.msk.f32.gmra.mxu2 %vm215_vm1, %v1285_v2 }
  0x3b   :  { %449 = vmatpush.msrb.mxu1 %v1350_v47  ;;  %425 = vmatpush.msrb.mxu3 %v1362_v50 }
  0x3d   :  { %450 = vmatpush.msrb.mxu1 %v1352_v48  ;;  %426 = vmatpush.msrb.mxu3 %v1366_v51 }
  0x3e   :  { %932 = vmatmul.msk.f32.gmra.mxu3 %vm165_vm0, %v1316_v31  ;;  %920 = vmatmul.msk.f32.gmra.mxu0 %vm165_vm0, %v1318_v32 }
  0x3f   :  { %451 = vmatpush.msrb.mxu1 %v1358_v49  ;;  %427 = vmatpush.msrb.mxu3 %v1370_v52 }
  0x41   :  { %452 = vmatpush.msrb.mxu1 %v1362_v50  ;;  %428 = vmatpush.msrb.mxu3 %v1374_v53 }
  0x42   :  { %927 = vmatmul.msk.f32.gmra.mxu2 %vm215_vm1, %v1281_v1 }
  0x43   :  { %453 = vmatpush.msrb.mxu1 %v1366_v51  ;;  %429 = vmatpush.msrb.mxu3 %v1378_v54 }
  0x45   :  { %454 = vmatpush.msrb.mxu1 %v1370_v52  ;;  %430 = vmatpush.msrb.mxu3 %v1382_v55 }
  0x47   :  { %455 = vmatpush.msrb.mxu1 %v1374_v53  ;;  %431 = vmatpush.msrb.mxu3 %v1384_v56 }
  0x49   :  { %456 = vmatpush.msrb.mxu1 %v1378_v54  ;;  %432 = vmatpush.msrb.mxu3 %v1390_v58 }
  0x4a   :  { %928 = vmatmul.msk.f32.gmra.mxu2 %vm215_vm1, %v1279_v0 }
  0x4b   :  { %457 = vmatpush.msrb.mxu1 %v1382_v55  ;;  %433 = vmatpush.msrb.mxu3 %v1394_v59 }
  0x4d   :  { %458 = vmatpush.msrb.mxu1 %v1384_v56  ;;  %434 = vmatpush.msrb.mxu3 %v1398_v61 }
  0x4f   :  { %459 = vmatpush.msrb.mxu1 %v1390_v58  ;;  %610 = vmatpush.msra.mxu3 %v535_v34 }
  0x51   :  { %460 = vmatpush.msrb.mxu1 %v1394_v59  ;;  %611 = vmatpush.msra.mxu3 %v534_v35 }
  0x53   :  { %461 = vmatpush.msrb.mxu1 %v1398_v61 }
  0xa3   :  { %v195_v36 = vpop.f32.mrf.mxu0 }
  0xa4   :  { %921 = vmatmul.msk.f32.vlgmr.msra.gmra.mxu1 %vm215_vm1, %v195_v36  ;;  %v533_v36 = vld [vmem:[#allocation7 + $0xe8] sm:$0xff] }
  0xa5   :  { %612 = vmatpush.msra.mxu3 %v533_v36 }
  0xa9   :  { %v332_v37 = vpop.f32.mrf.mxu3 }
  0xaa   :  { %933 = vmatmul.msk.f32.vlgmr.msrb.gmra.mxu0 %vm215_vm1, %v332_v37  ;;  %v532_v37 = vld [vmem:[#allocation7 + $0xe0] sm:$0xff] }
  0xab   :  { %v198_v38 = vpop.f32.mrf.mxu0  ;;  %613 = vmatpush.msra.mxu3 %v532_v37 }
  0xac   :  { %922 = vmatmul.msk.f32.gmra.mxu1 %vm215_vm1, %v198_v38  ;;  %v531_v38 = vld [vmem:[#allocation7 + $0xd8] sm:$0xff] }
  0xad   :  { %614 = vmatpush.msra.mxu3 %v531_v38 }
  0xb1   :  { %v335_v39 = vpop.f32.mrf.mxu3 }
  0xb2   :  { %934 = vmatmul.msk.f32.gmra.mxu0 %vm215_vm1, %v335_v39  ;;  %v530_v39 = vld [vmem:[#allocation7 + $0xd0] sm:$0xff] }
  0xb3   :  { %v201_v40 = vpop.f32.mrf.mxu0  ;;  %615 = vmatpush.msra.mxu3 %v530_v39 }
  0xb4   :  { %923 = vmatmul.msk.f32.gmra.mxu1 %vm215_vm1, %v201_v40  ;;  %v529_v40 = vld [vmem:[#allocation7 + $0xc8] sm:$0xff] }
  0xb5   :  { %v286_v57 = vpop.f32.mrf.mxu2  ;;  %616 = vmatpush.msra.mxu3 %v529_v40  ;;  %v957_v40 = vld [vmem:[%s1519_s7] ss:$0 sm:$0xff] }
  0xb9   :  { %v338_v41 = vpop.f32.mrf.mxu3 }
  0xba   :  { %935 = vmatmul.msk.f32.gmra.mxu0 %vm215_vm1, %v338_v41  ;;  %v528_v41 = vld [vmem:[#allocation7 + $0xc0] sm:$0xff] }
  0xbb   :  { %v204_v42 = vpop.f32.mrf.mxu0  ;;  %617 = vmatpush.msra.mxu3 %v528_v41 }
  0xbc   :  { %924 = vmatmul.msk.f32.gmra.mxu1 %vm215_vm1, %v204_v42 }
  0xbd   :  { %v289_v62 = vpop.f32.mrf.mxu2 }
  0xc1   :  { %v341_v43 = vpop.f32.mrf.mxu3 }
  0xc2   :  { %936 = vmatmul.msk.f32.gmra.mxu0 %vm215_vm1, %v341_v43 }
  0xc5   :  { %v292_v2 = vpop.f32.mrf.mxu2 }
  0xcd   :  { %v295_v12 = vpop.f32.mrf.mxu2 }
 0x121   :  { %v245_v60 = vpop.f32.mrf.mxu1 }
 0x122   :  { %v287_v7 = vadd.f32 %v286_v57, %v245_v60  ;;  %v527_v57 = vld [vmem:[#allocation7 + $0xb8] sm:$0xff] }
 0x123   :  { %618 = vmatpush.msra.mxu3 %v527_v57 }
 0x127   :  { %v382_v63 = vpop.f32.mrf.mxu0 }
 0x128   :  { %v1404_v13 = vadd.f32 %v382_v63, %v287_v7  ;;  %v524_v7 = vld [vmem:[#allocation7 + $0xa0] sm:$0xff] }
 0x129   :  { %v248_v0 = vpop.f32.mrf.mxu1 }
 0x12a   :  { %v290_v4 = vadd.f32 %v289_v62, %v248_v0  ;;  %v439_v17 = vmul.f32 %v1404_v13, %v1404_v13  ;;  %v526_v62 = vld [vmem:[#allocation7 + $0xb0] sm:$0xff] }
 0x12b   :  { %619 = vmatpush.msra.mxu3 %v526_v62  ;;  %v958_v62 = vld [vmem:[%s1520_s8] ss:$0 sm:$0xff] }
 0x12f   :  { %v385_v1 = vpop.f32.mrf.mxu0 }
 0x130   :  { %v1402_v10 = vadd.f32 %v385_v1, %v290_v4 }
 0x131   :  { %v251_v3 = vpop.f32.mrf.mxu1 }
 0x132   :  { %v293_v8 = vadd.f32 %v292_v2, %v251_v3  ;;  %v440_v15 = vmul.f32 %v1402_v10, %v1402_v10  ;;  %v416_v18 = vadd.f32 %v1402_v10, %v1404_v13  ;;  %v525_v2 = vld [vmem:[#allocation7 + $0xa8] sm:$0xff] }
 0x133   :  { %620 = vmatpush.msra.mxu3 %v525_v2 }
 0x134   :  { %v443_v23 = vadd.f32 %v440_v15, %v439_v17  ;;  %v522_v15 = vld [vmem:[#allocation7 + $0x90] sm:$0xff]  ;;  %v521_v17 = vld [vmem:[#allocation7 + $0x88] sm:$0xff] }
 0x135   :  { %621 = vmatpush.msra.mxu3 %v524_v7 }
 0x137   :  { %v388_v9 = vpop.f32.mrf.mxu0 }
 0x138   :  { %v1406_v14 = vadd.f32 %v388_v9, %v293_v8  ;;  %v523_v9 = vld [vmem:[#allocation7 + $0x98] sm:$0xff] }
 0x139   :  { %v254_v11 = vpop.f32.mrf.mxu1  ;;  %622 = vmatpush.msra.mxu3 %v523_v9 }
 0x13a   :  { %v296_v16 = vadd.f32 %v295_v12, %v254_v11  ;;  %v441_v21 = vmul.f32 %v1406_v14, %v1406_v14  ;;  %v417_v24 = vadd.f32 %v416_v18, %v1406_v14 }
 0x13b   :  { %623 = vmatpush.msra.mxu3 %v522_v15  ;;  %v579_v15 = vld [vmem:[#allocation7 + $0x70] sm:$0xff] }
 0x13c   :  { %v444_v28 = vadd.f32 %v443_v23, %v441_v21 }
 0x13d   :  { %624 = vmatpush.msra.mxu3 %v521_v17  ;;  %v578_v17 = vld [vmem:[#allocation7 + $0x68] sm:$0xff] }
 0x13f   :  { %v391_v22 = vpop.f32.mrf.mxu0 }
 0x140   :  { %v1417_v25 = vadd.f32 %v391_v22, %v296_v16  ;;  %v520_v22 = vld [vmem:[#allocation7 + $0x80] sm:$0xff] }
 0x141   :  { %625 = vmatpush.msra.mxu3 %v520_v22  ;;  %v683_v22 = vld [vmem:[#allocation7 + $0x170] sm:$0xff] }
 0x142   :  { %v442_v26 = vmul.f32 %v1417_v25, %v1417_v25  ;;  %v418_v27 = vadd.f32 %v417_v24, %v1417_v25 }
 0x144   :  { %435 = vmatmul.f32.vlgmr.msrb.gmra.mxu3 %v418_v27  ;;  %v445_v33 = vadd.f32 %v444_v28, %v442_v26 }
 0x146   :  { %462 = vmatmul.f32.vlgmr.msrb.gmra.mxu1 %v445_v33 }
 0x1c3   :  { %v463_v42 = vpop.f32.mrf.mxu1 }
 0x1c4   :  { %v473_v43 = vrot.slane %v463_v42, 4 }
 0x1c6   :  { %v474_v60 = vadd.f32 %v473_v43, %v463_v42 }
 0x1c7   :  { %v436_v63 = vpop.f32.mrf.mxu3 }
 0x1c8   :  { %v475_v0 = vrot.slane %v474_v60, 2  ;;  %v466_v1 = vrot.slane %v436_v63, 4 }
 0x1ca   :  { %v476_v3 = vadd.f32 %v475_v0, %v474_v60  ;;  %v467_v4 = vadd.f32 %v466_v1, %v436_v63 }
 0x1cc   :  { %v468_v8 = vrot.slane %v467_v4, 2  ;;  %v477_v11 = vrot.slane %v476_v3, 1 }
 0x1ce   :  { %v469_v12 = vadd.f32 %v468_v8, %v467_v4  ;;  %v478_v18 = vadd.f32 %v477_v11, %v476_v3 }
 0x1d0   :  { %v470_v16 = vrot.slane %v469_v12, 1  ;;  %v479_v24 = vmul.f32 0.001953125, %v478_v18  ;;  %v684_v18 = vld [vmem:[#allocation7 + $0x178] sm:$0xff] }
 0x1d2   :  { %v471_v21 = vadd.f32 %v470_v16, %v469_v12  ;;  %v580_v12 = vld [vmem:[#allocation7 + $0x78] sm:$0xff] }
 0x1d3   :  { %581 = vmatpush.msra.mxu0 %v580_v12 }
 0x1d4   :  { %v472_v23 = vmul.f32 0.001953125, %v471_v21  ;;  %v577_v21 = vld [vmem:[#allocation7 + $0x60] sm:$0xff] }
 0x1d5   :  { %582 = vmatpush.msra.mxu0 %v579_v15 }
 0x1d6   :  { %v480_v26 = vmul.f32 %v472_v23, %v472_v23  ;;  %v485_v39 = vsub.f32 %v1417_v25, %v472_v23  ;;  %v482_v41 = vsub.f32 %v1404_v13, %v472_v23  ;;  %v484_v42 = vsub.f32 %v1406_v14, %v472_v23 }
 0x1d7   :  { %v483_v43 = vsub.f32 %v1402_v10, %v472_v23  ;;  %583 = vmatpush.msra.mxu0 %v578_v17  ;;  %v576_v23 = vld [vmem:[#allocation7 + $0x58] sm:$0xff] }
 0x1d8   :  { %v481_v27 = vsub.f32 %v479_v24, %v480_v26  ;;  %v682_v24 = vld [vmem:[#allocation7 + $0x168] sm:$0xff]  ;;  %v575_v26 = vld [vmem:[#allocation7 + $0x50] sm:$0xff] }
 0x1d9   :  { %584 = vmatpush.msra.mxu0 %v577_v21 }
 0x1da   :  { %v486_v28 = vadd.f32 0.01, %v481_v27  ;;  %v574_v27 = vld [vmem:[#allocation7 + $0x48] sm:$0xff] }
 0x1db   :  { %585 = vmatpush.msra.mxu0 %v576_v23 }
 0x1dc   :  { %961 = vrsqrt.f32 %v486_v28  ;;  %vm493_vm3 = vweird.f32 %v486_v28 }
 0x1dd   :  { %586 = vmatpush.msra.mxu0 %v575_v26 }
 0x1df   :  { %587 = vmatpush.msra.mxu0 %v574_v27 }
 0x1e2   :  { %v962_v33 = vpop.eup %961 }
 0x1e3   :  { %v488_v34 = vmul.f32 %v962_v33, %v486_v28  ;;  %vm494_vm2 = vweird.f32 %v962_v33  ;;  %v573_v28 = vld [vmem:[#allocation7 + $0x40] sm:$0xff] }
 0x1e4   :  { %vm495_vm4 = vmor %vm493_vm3, %vm494_vm2  ;;  %588 = vmatpush.msra.mxu0 %v573_v28 }
 0x1e5   :  { %v489_v35 = vmul.f32 %v962_v33, %v488_v34  ;;  %v679_v34 = vld [vmem:[#allocation7 + $0x150] sm:$0xff] }
 0x1e7   :  { %v490_v36 = vmul.f32 0.5, %v489_v35  ;;  %v571_v35 = vld [vmem:[#allocation7 + $0x30] sm:$0xff] }
 0x1e9   :  { %v491_v37 = vsub.f32 1.5, %v490_v36  ;;  %v570_v36 = vld [vmem:[#allocation7 + $0x28] sm:$0xff] }
 0x1eb   :  { %v492_v38 = vmul.f32 %v962_v33, %v491_v37  ;;  %v569_v37 = vld [vmem:[#allocation7 + $0x20] sm:$0xff] }
 0x1ed   :  { %v496_v57 = vsel %vm495_vm4, %v962_v33, %v492_v38  ;;  %v572_v33 = vld [vmem:[#allocation7 + $0x38] sm:$0xff] }
 0x1ee   :  { %v500_v60 = vmul.f32 %v496_v57, %v485_v39  ;;  %v497_v63 = vmul.f32 %v496_v57, %v482_v41  ;;  %v499_v0 = vmul.f32 %v496_v57, %v484_v42  ;;  %v498_v25 = vmul.f32 %v496_v57, %v483_v43  ;;  %589 = vmatpush.msra.mxu0 %v572_v33  ;;  %v676_v38 = vld [vmem:[#allocation7 + $0x138] sm:$0xff]  ;;  %v675_v39 = vld [vmem:[#allocation7 + $0x130] sm:$0xff]  ;;  %v669_v43 = vld [vmem:[#allocation7 + $0x100] sm:$0xff] }
 0x1ef   :  { %v671_v41 = vld [vmem:[#allocation7 + $0x110] sm:$0xff]  ;;  %v566_v57 = vld [vmem:[#allocation7 + $0x8] sm:$0xff] }
 0x1f0   :  { %v507_v1 = vmul.f32 %v957_v40, %v500_v60  ;;  %v504_v2 = vmul.f32 %v957_v40, %v497_v63  ;;  %v506_v3 = vmul.f32 %v957_v40, %v499_v0  ;;  %v505_v4 = vmul.f32 %v957_v40, %v498_v25  ;;  %590 = vmatpush.msra.mxu0 %v571_v35  ;;  %v672_v40 = vld [vmem:[#allocation7 + $0x118] sm:$0xff]  ;;  %v567_v42 = vld [vmem:[#allocation7 + $0x10] sm:$0xff]  ;;  %v565_v60 = vld [vmem:[#allocation7] sm:$0xff] }
 0x1f2   :  { %v514_v7 = vadd.f32 %v958_v62, %v507_v1  ;;  %v511_v8 = vadd.f32 %v958_v62, %v504_v2  ;;  %v513_v13 = vadd.f32 %v958_v62, %v506_v3  ;;  %v512_v11 = vadd.f32 %v958_v62, %v505_v4  ;;  %591 = vmatpush.msra.mxu0 %v570_v36 }
 0x1f4   :  { %v518_v9 = vmax.f32 %v514_v7, 0.0  ;;  %v515_v14 = vmax.f32 %v511_v8, 0.0  ;;  %v517_v10 = vmax.f32 %v513_v13, 0.0  ;;  %v516_v16 = vmax.f32 %v512_v11, 0.0  ;;  %592 = vmatpush.msra.mxu0 %v569_v37 }
 0x1f6   :  { %548 = vmatpush.msrb.mxu2 %v518_v9  ;;  %626 = vmatmul.f32.vlgmr.msra.gmra.mxu3 %v515_v14 }
 0x1f7   :  { %651 = vmatpush.msra.mxu1 %v518_v9 }
 0x1f8   :  { %549 = vmatpush.msrb.mxu2 %v517_v10 }
 0x1f9   :  { %652 = vmatpush.msra.mxu1 %v517_v10 }
 0x1fa   :  { %550 = vmatpush.msrb.mxu2 %v516_v16 }
 0x1fb   :  { %653 = vmatpush.msra.mxu1 %v516_v16 }
 0x1fc   :  { %551 = vmatpush.msrb.mxu2 %v515_v14 }
 0x1fd   :  { %654 = vmatpush.msra.mxu1 %v515_v14  ;;  %937 = vmatmul.msk.f32.vlgmr.msrb.gmra.mxu2 %vm165_vm0, %v1293_v6  ;;  %v681_v6 = vld [vmem:[#allocation7 + $0x160] sm:$0xff] }
 0x1fe   :  { %629 = vmatmul.f32.gmra.mxu3 %v516_v16  ;;  %941 = vmatmul.msk.f32.vlgmr.msra.gmra.mxu1 %vm165_vm0, %v1290_v5  ;;  %v680_v5 = vld [vmem:[#allocation7 + $0x158] sm:$0xff] }
 0x1ff   :  { %685 = vmatpush.msra.mxu2 %v684_v18  ;;  %723 = vmatpush.msrb.mxu1 %v1338_v44 }
 0x201   :  { %686 = vmatpush.msra.mxu2 %v683_v22  ;;  %724 = vmatpush.msrb.mxu1 %v1342_v45 }
 0x203   :  { %687 = vmatpush.msra.mxu2 %v682_v24  ;;  %725 = vmatpush.msrb.mxu1 %v1346_v46 }
 0x205   :  { %938 = vmatmul.msk.f32.gmra.mxu2 %vm165_vm0, %v1301_v20  ;;  %726 = vmatpush.msrb.mxu1 %v1350_v47  ;;  %v678_v20 = vld [vmem:[#allocation7 + $0x148] sm:$0xff] }
 0x206   :  { %632 = vmatmul.f32.gmra.mxu3 %v517_v10  ;;  %942 = vmatmul.msk.f32.gmra.mxu1 %vm165_vm0, %v1299_v19  ;;  %v677_v19 = vld [vmem:[#allocation7 + $0x140] sm:$0xff] }
 0x207   :  { %688 = vmatpush.msra.mxu2 %v681_v6  ;;  %727 = vmatpush.msrb.mxu1 %v1352_v48 }
 0x209   :  { %689 = vmatpush.msra.mxu2 %v680_v5  ;;  %728 = vmatpush.msrb.mxu1 %v1358_v49 }
 0x20b   :  { %690 = vmatpush.msra.mxu2 %v679_v34  ;;  %729 = vmatpush.msrb.mxu1 %v1362_v50 }
 0x20d   :  { %939 = vmatmul.msk.f32.gmra.mxu2 %vm165_vm0, %v1309_v30  ;;  %730 = vmatpush.msrb.mxu1 %v1366_v51  ;;  %v674_v30 = vld [vmem:[#allocation7 + $0x128] sm:$0xff] }
 0x20e   :  { %635 = vmatmul.f32.gmra.mxu3 %v518_v9  ;;  %943 = vmatmul.msk.f32.gmra.mxu1 %vm165_vm0, %v1307_v29  ;;  %v673_v29 = vld [vmem:[#allocation7 + $0x120] sm:$0xff] }
 0x20f   :  { %691 = vmatpush.msra.mxu2 %v678_v20  ;;  %731 = vmatpush.msrb.mxu1 %v1370_v52 }
 0x211   :  { %692 = vmatpush.msra.mxu2 %v677_v19  ;;  %732 = vmatpush.msrb.mxu1 %v1374_v53 }
 0x213   :  { %693 = vmatpush.msra.mxu2 %v676_v38  ;;  %733 = vmatpush.msrb.mxu1 %v1378_v54 }
 0x215   :  { %940 = vmatmul.msk.f32.gmra.mxu2 %vm165_vm0, %v1318_v32  ;;  %734 = vmatpush.msrb.mxu1 %v1382_v55  ;;  %v670_v32 = vld [vmem:[#allocation7 + $0x108] sm:$0xff] }
 0x216   :  { %944 = vmatmul.msk.f32.gmra.mxu1 %vm165_vm0, %v1316_v31  ;;  %694 = vmatpush.msra.mxu2 %v675_v39  ;;  %v568_v31 = vld [vmem:[#allocation7 + $0x18] sm:$0xff] }
 0x217   :  { %735 = vmatpush.msrb.mxu1 %v1384_v56  ;;  %593 = vmatpush.msra.mxu0 %v568_v31 }
 0x218   :  { %695 = vmatpush.msra.mxu2 %v674_v30 }
 0x219   :  { %736 = vmatpush.msrb.mxu1 %v1390_v58  ;;  %594 = vmatpush.msra.mxu0 %v567_v42  ;;  %v869_v42 = vld [vmem:[#allocation11 + $0x78] sm:$0xff] }
 0x21a   :  { %696 = vmatpush.msra.mxu2 %v673_v29  ;;  %870 = vmatpush.msrb.mxu3 %v869_v42 }
 0x21b   :  { %737 = vmatpush.msrb.mxu1 %v1394_v59  ;;  %595 = vmatpush.msra.mxu0 %v566_v57 }
 0x21c   :  { %697 = vmatpush.msra.mxu2 %v672_v40 }
 0x21d   :  { %738 = vmatpush.msrb.mxu1 %v1398_v61  ;;  %596 = vmatpush.msra.mxu0 %v565_v60  ;;  %v867_v60 = vld [vmem:[#allocation11 + $0x68] sm:$0xff] }
 0x21e   :  { %698 = vmatpush.msra.mxu2 %v671_v41 }
 0x21f   :  { %750 = vmatpush.msrb.mxu0 %v1338_v44 }
 0x220   :  { %699 = vmatpush.msra.mxu2 %v670_v32 }
 0x221   :  { %751 = vmatpush.msrb.mxu0 %v1342_v45 }
 0x222   :  { %700 = vmatpush.msra.mxu2 %v669_v43  ;;  %v868_v43 = vld [vmem:[#allocation11 + $0x70] sm:$0xff] }
 0x223   :  { %752 = vmatpush.msrb.mxu0 %v1346_v46  ;;  %871 = vmatpush.msrb.mxu3 %v868_v43 }
 0x225   :  { %753 = vmatpush.msrb.mxu0 %v1350_v47  ;;  %872 = vmatpush.msrb.mxu3 %v867_v60 }
 0x227   :  { %754 = vmatpush.msrb.mxu0 %v1352_v48 }
 0x229   :  { %755 = vmatpush.msrb.mxu0 %v1358_v49 }
 0x22b   :  { %756 = vmatpush.msrb.mxu0 %v1362_v50 }
 0x22d   :  { %757 = vmatpush.msrb.mxu0 %v1366_v51 }
 0x22f   :  { %758 = vmatpush.msrb.mxu0 %v1370_v52 }
 0x231   :  { %759 = vmatpush.msrb.mxu0 %v1374_v53 }
 0x233   :  { %760 = vmatpush.msrb.mxu0 %v1378_v54 }
 0x235   :  { %761 = vmatpush.msrb.mxu0 %v1382_v55 }
 0x237   :  { %762 = vmatpush.msrb.mxu0 %v1384_v56 }
 0x239   :  { %763 = vmatpush.msrb.mxu0 %v1390_v58 }
 0x23b   :  { %764 = vmatpush.msrb.mxu0 %v1394_v59 }
 0x23d   :  { %765 = vmatpush.msrb.mxu0 %v1398_v61 }
 0x279   :  { %v627_v52 = vpop.f32.mrf.mxu3 }
 0x27b   :  { %v656_v44 = vpop.f32.mrf.mxu1 }
 0x27c   :  { %701 = vmatmul.f32.vlgmr.msra.gmra.mxu2 %v656_v44 }
 0x280   :  { %v553_v45 = vpop.f32.mrf.mxu2 }
 0x281   :  { %597 = vmatmul.f32.vlgmr.msra.gmra.mxu0 %v553_v45  ;;  %v630_v55 = vpop.f32.mrf.mxu3  ;;  %v866_v45 = vld [vmem:[#allocation11 + $0x60] sm:$0xff] }
 0x282   :  { %873 = vmatpush.msrb.mxu3 %v866_v45 }
 0x283   :  { %v659_v46 = vpop.f32.mrf.mxu1 }
 0x284   :  { %704 = vmatmul.f32.gmra.mxu2 %v659_v46 }
 0x288   :  { %v556_v47 = vpop.f32.mrf.mxu2 }
 0x289   :  { %600 = vmatmul.f32.gmra.mxu0 %v556_v47  ;;  %v633_v59 = vpop.f32.mrf.mxu3  ;;  %v865_v47 = vld [vmem:[#allocation11 + $0x58] sm:$0xff] }
 0x28a   :  { %874 = vmatpush.msrb.mxu3 %v865_v47 }
 0x28b   :  { %v662_v48 = vpop.f32.mrf.mxu1 }
 0x28c   :  { %707 = vmatmul.f32.gmra.mxu2 %v662_v48 }
 0x290   :  { %v559_v49 = vpop.f32.mrf.mxu2 }
 0x291   :  { %603 = vmatmul.f32.gmra.mxu0 %v559_v49  ;;  %v636_v7 = vpop.f32.mrf.mxu3  ;;  %v959_v49 = vld [vmem:[%s1521_s9] ss:$0 sm:$0xff]  ;;  %s1176_s9 = smov [#allocation14]  }
 0x293   :  { %v665_v50 = vpop.f32.mrf.mxu1 }
 0x294   :  { %710 = vmatmul.f32.gmra.mxu2 %v665_v50 }
 0x298   :  { %v562_v51 = vpop.f32.mrf.mxu2 }
 0x299   :  { %606 = vmatmul.f32.gmra.mxu0 %v562_v51 }
 0x2fe   :  { %v598_v53 = vpop.f32.mrf.mxu0 }
 0x2ff   :  { %v702_v54 = vpop.f32.mrf.mxu2  ;;  %v628_v63 = vadd.f32 %v627_v52, %v598_v53 }
 0x301   :  { %v1482_v2 = vadd.f32 %v702_v54, %v628_v63  ;;  %v864_v54 = vld [vmem:[#allocation11 + $0x50] sm:$0xff] }
 0x302   :  { %875 = vmatpush.msrb.mxu3 %v864_v54 }
 0x303   :  { %v743_v13 = vmul.f32 %v1482_v2, %v1482_v2 }
 0x306   :  { %v601_v56 = vpop.f32.mrf.mxu0 }
 0x307   :  { %v705_v58 = vpop.f32.mrf.mxu2  ;;  %v631_v61 = vadd.f32 %v630_v55, %v601_v56  ;;  %v960_v56 = vld [vmem:[%s1522_s10] ss:$0 sm:$0xff]  ;;  %s899_s10 = sshll.u32 %s1176_s9, 4  ;;  %s900_s10 = int_to_ptr.vmem [resolvable:$true] %s899_s10 }
 0x309   :  { %v1480_v1 = vadd.f32 %v705_v58, %v631_v61 }
 0x30b   :  { %v744_v4 = vmul.f32 %v1480_v1, %v1480_v1  ;;  %v720_v9 = vadd.f32 %v1480_v1, %v1482_v2 }
 0x30d   :  { %v747_v12 = vadd.f32 %v744_v4, %v743_v13 }
 0x30e   :  { %v604_v62 = vpop.f32.mrf.mxu0 }
 0x30f   :  { %v634_v0 = vadd.f32 %v633_v59, %v604_v62  ;;  %v708_v25 = vpop.f32.mrf.mxu2  ;;  %v863_v62 = vld [vmem:[#allocation11 + $0x48] sm:$0xff] }
 0x310   :  { %876 = vmatpush.msrb.mxu3 %v863_v62 }
 0x311   :  { %v1484_v3 = vadd.f32 %v708_v25, %v634_v0 }
 0x313   :  { %v745_v14 = vmul.f32 %v1484_v3, %v1484_v3  ;;  %v721_v15 = vadd.f32 %v720_v9, %v1484_v3  ;;  %v860_v9 = vld [vmem:[#allocation11 + $0x30] sm:$0xff] }
 0x315   :  { %v748_v17 = vadd.f32 %v747_v12, %v745_v14 }
 0x316   :  { %v607_v8 = vpop.f32.mrf.mxu0 }
 0x317   :  { %v637_v11 = vadd.f32 %v636_v7, %v607_v8  ;;  %v711_v10 = vpop.f32.mrf.mxu2  ;;  %v861_v7 = vld [vmem:[#allocation11 + $0x38] sm:$0xff] }
 0x319   :  { %v717_v16 = vadd.f32 %v711_v10, %v637_v11  ;;  %v859_v10 = vld [vmem:[#allocation11 + $0x28] sm:$0xff] }
 0x31b   :  { %v722_v18 = vadd.f32 %v721_v15, %v717_v16  ;;  %v746_v21 = vmul.f32 %v717_v16, %v717_v16  ;;  %v858_v15 = vld [vmem:[#allocation11 + $0x20] sm:$0xff] }
 0x31d   :  { %v749_v22 = vadd.f32 %v748_v17, %v746_v21  ;;  %739 = vmatmul.f32.vlgmr.msrb.gmra.mxu1 %v722_v18  ;;  %v823_v17 = vld [vmem:[#allocation13] sm:$0xff]  ;;  %v857_v18 = vld [vmem:[#allocation11 + $0x18] sm:$0xff]  ;;  %v856_v21 = vld [vmem:[#allocation11 + $0x10] sm:$0xff] }
 0x31f   :  { %766 = vmatmul.f32.vlgmr.msrb.gmra.mxu0 %v749_v22  ;;  %v855_v22 = vld [vmem:[#allocation11 + $0x8] sm:$0xff] }
 0x39a   :  { %v740_v23 = vpop.f32.mrf.mxu1 }
 0x39b   :  { %v770_v24 = vrot.slane %v740_v23, 4 }
 0x39c   :  { %v767_v26 = vpop.f32.mrf.mxu0 }
 0x39d   :  { %v771_v27 = vadd.f32 %v770_v24, %v740_v23  ;;  %v777_v6 = vrot.slane %v767_v26, 4  ;;  %v854_v23 = vld [vmem:[#allocation11] sm:$0xff]  ;;  %v824_v24 = vld [vmem:[#allocation13 + $0x8] sm:$0xff] }
 0x39f   :  { %v772_v28 = vrot.slane %v771_v27, 2  ;;  %v778_v5 = vadd.f32 %v777_v6, %v767_v26 }
 0x3a1   :  { %v773_v33 = vadd.f32 %v772_v28, %v771_v27  ;;  %v779_v34 = vrot.slane %v778_v5, 2 }
 0x3a3   :  { %v774_v35 = vrot.slane %v773_v33, 1  ;;  %v780_v36 = vadd.f32 %v779_v34, %v778_v5 }
 0x3a5   :  { %v775_v20 = vadd.f32 %v774_v35, %v773_v33  ;;  %v781_v37 = vrot.slane %v780_v36, 1 }
 0x3a7   :  { %v776_v19 = vmul.f32 0.001953125, %v775_v20  ;;  %v782_v38 = vadd.f32 %v781_v37, %v780_v36 }
 0x3a9   :  { %v783_v39 = vmul.f32 0.001953125, %v782_v38  ;;  %v784_v30 = vmul.f32 %v776_v19, %v776_v19  ;;  %v789_v48 = vsub.f32 %v717_v16, %v776_v19  ;;  %v788_v50 = vsub.f32 %v1484_v3, %v776_v19 }
 0x3aa   :  { %v787_v51 = vsub.f32 %v1480_v1, %v776_v19  ;;  %v786_v52 = vsub.f32 %v1482_v2, %v776_v19  ;;  %v862_v1 = vld [vmem:[#allocation11 + $0x40] sm:$0xff] }
 0x3ab   :  { %v785_v29 = vsub.f32 %v783_v39, %v784_v30  ;;  %877 = vmatpush.msrb.mxu3 %v862_v1 }
 0x3ad   :  { %v790_v40 = vadd.f32 0.01, %v785_v29  ;;  %878 = vmatpush.msrb.mxu3 %v861_v7 }
 0x3af   :  { %963 = vrsqrt.f32 %v790_v40  ;;  %vm797_vm6 = vweird.f32 %v790_v40  ;;  %879 = vmatpush.msrb.mxu3 %v860_v9 }
 0x3b1   :  { %880 = vmatpush.msrb.mxu3 %v859_v10 }
 0x3b3   :  { %881 = vmatpush.msrb.mxu3 %v858_v15 }
 0x3b5   :  { %v964_v41 = vpop.eup %963  ;;  %882 = vmatpush.msrb.mxu3 %v857_v18 }
 0x3b6   :  { %v792_v31 = vmul.f32 %v964_v41, %v790_v40  ;;  %vm798_vm5 = vweird.f32 %v964_v41 }
 0x3b7   :  { %vm799_vm7 = vmor %vm797_vm6, %vm798_vm5  ;;  %883 = vmatpush.msrb.mxu3 %v856_v21 }
 0x3b8   :  { %v793_v32 = vmul.f32 %v964_v41, %v792_v31 }
 0x3b9   :  { %884 = vmatpush.msrb.mxu3 %v855_v22 }
 0x3ba   :  { %v794_v57 = vmul.f32 0.5, %v793_v32 }
 0x3bb   :  { %885 = vmatpush.msrb.mxu3 %v854_v23 }
 0x3bc   :  { %v795_v44 = vsub.f32 1.5, %v794_v57 }
 0x3be   :  { %v796_v46 = vmul.f32 %v964_v41, %v795_v44 }
 0x3c0   :  { %v800_v53 = vsel %vm799_vm7, %v964_v41, %v796_v46 }
 0x3c1   :  { %v804_v55 = vmul.f32 %v800_v53, %v789_v48  ;;  %v803_v58 = vmul.f32 %v800_v53, %v788_v50  ;;  %v802_v59 = vmul.f32 %v800_v53, %v787_v51  ;;  %v801_v61 = vmul.f32 %v800_v53, %v786_v52 }
 0x3c3   :  { %v811_v63 = vmul.f32 %v959_v49, %v804_v55  ;;  %v810_v0 = vmul.f32 %v959_v49, %v803_v58  ;;  %v809_v25 = vmul.f32 %v959_v49, %v802_v59  ;;  %v808_v4 = vmul.f32 %v959_v49, %v801_v61 }
 0x3c5   :  { %v818_v3 = vadd.f32 %v960_v56, %v811_v63  ;;  %v817_v2 = vadd.f32 %v960_v56, %v810_v0  ;;  %v816_v13 = vadd.f32 %v960_v56, %v809_v25  ;;  %v815_v11 = vadd.f32 %v960_v56, %v808_v4 }
 0x3c7   :  { %v822_v8 = vmax.f32 %v818_v3, 0.0  ;;  %v821_v14 = vmax.f32 %v817_v2, 0.0  ;;  %v820_v12 = vmax.f32 %v816_v13, 0.0  ;;  %v819_v16 = vmax.f32 %v815_v11, 0.0 }
 0x3c9   :  { %843 = vmatpush.msra.mxu1 %v822_v8 }
 0x3cb   :  { %844 = vmatpush.msra.mxu1 %v821_v14 }
 0x3cd   :  { %845 = vmatpush.msra.mxu1 %v820_v12 }
 0x3cf   :  { %846 = vmatpush.msra.mxu1 %v819_v16 }
 0x3d0   :  { %945 = vmatmul.msk.f32.vlgmr.msra.gmra.mxu1 %vm165_vm0, %v823_v17 }
 0x3d8   :  { %946 = vmatmul.msk.f32.gmra.mxu1 %vm165_vm0, %v824_v24 }
 0x44d   :  { %v848_v26 = vpop.f32.mrf.mxu1 }
 0x44e   :  { %886 = vmatmul.f32.vlgmr.msrb.gmra.mxu3 %v848_v26 }
 0x455   :  { %v851_v27 = vpop.f32.mrf.mxu1 }
 0x456   :  { %889 = vmatmul.f32.gmra.mxu3 %v851_v27 }
 0x4d1   :  { %v887_v6 = vpop.f32.mrf.mxu3 }
 0x4d2   :  { %893 = vst [vmem:[#allocation14] sm:$0xff] %v887_v6 }
 0x4d9   :  { %v890_v28 = vpop.f32.mrf.mxu3 }
 0x4da   :  { %894 = vst [vmem:[#allocation14 + $0x8] sm:$0xff] %v890_v28 }
 0x4db   :  { %907 = dma.vmem_to_hbm [thread:$0]  %s900_s10, 256, %s902_s5, [#allocation4], %s1168_s25, %s1168_s25, %s1169_s26  }
 0x4dc   :  { %1165 = dma.done.wait [#allocation4], 256  }
 0x4dd   :  { %1166 = vsyncadd [#allocation4], 4294967040 }
 0x4de   :  { %912 = vsyncpa [#allocation3], 1 }
 0x4df   :  { %913 = vsyncpa [#allocation6], 1 }
 0x4e0   :  { %914 = vsyncpa [#allocation9], 1 }
 0x4e1   :  { %915 = vsyncpa [#allocation12], 1 }
 0x4e2   :  { %916 = vsyncpa [#allocation4], 1 }

</bundles_post_ra>
